<compile_context>
chip_gen: v5e
topology: v5e:2x2
jax: 0.10.0
libtpu: 0.0.40
codegen_flags: <defaults>
</compile_context>

<pallas_src>
import jax
import jax.numpy as jnp
from jax.experimental import pallas as pl
from jax.experimental.pallas import tpu as pltpu


def residual_block_kernel(x_ref, w1_ref, w2_ref, p_ref, o_ref):
    # x_ref: (TB, D); w*_ref: (D, D) pre-transposed so y = x @ w + b
    # p_ref: (8, D) packed rows: 0=b1, 1=b2, 2=gamma, 3=beta (rows 4..7 are padding)
    x = x_ref[...]
    params = p_ref[...]
    b1 = params[0:1, :]
    b2 = params[1:2, :]
    gamma = params[2:3, :]
    beta = params[3:4, :]

    # fc1 + ReLU (MXU, f32 accumulation)
    h = jnp.dot(x, w1_ref[...], preferred_element_type=jnp.float32) + b1
    h = jnp.maximum(h, 0.0)

    # fc2 + bias + residual
    out = jnp.dot(h, w2_ref[...], preferred_element_type=jnp.float32) + b2 + x

    # LayerNorm over last dim (eps=1e-5, biased variance, affine)
    mean = jnp.mean(out, axis=-1, keepdims=True)
    centered = out - mean
    var = jnp.mean(centered * centered, axis=-1, keepdims=True)
    inv = jax.lax.rsqrt(var + 1e-5)
    normed = centered * inv * gamma + beta

    # final ReLU
    o_ref[...] = jnp.maximum(normed, 0.0).astype(o_ref.dtype)


def _tile_footprint_bytes(tb, D):
    """Approximate double-buffered VMEM footprint for one grid step (f32)."""
    row_tiles = 2 * (2 * tb * D * 4)      # x tile + out tile, double-buffered
    weights = 2 * (2 * D * D * 4)          # w1t + w2t, double-buffered
    params = 2 * (8 * D * 4)               # packed bias/gamma/beta
    return row_tiles + weights + params


def _pick_tb(B, D, vmem_budget_bytes=48 << 20, cap=512):
    """Largest valid batch tile (<= cap) whose tiles fit the VMEM budget.

    Valid tiles are divisors of B that are either B itself (full-extent block,
    always legal) or multiples of 8 (sublane-aligned).  For small B this
    collapses the grid to a single step.
    """
    tb = 1
    for cand in range(1, min(B, cap) + 1):
        if B % cand != 0:
            continue
        if cand != B and cand % 8 != 0:
            continue
        if _tile_footprint_bytes(cand, D) <= vmem_budget_bytes:
            tb = cand
    # Fall back: B itself always satisfies the layout rule; only reject it on VMEM grounds.
    if tb == 1 and B <= cap and _tile_footprint_bytes(B, D) <= vmem_budget_bytes:
        tb = B
    return tb


def residual_block(x, w1, b1, w2, b2, gamma, beta, *, tb=None):
    """x: (B, D). w1/w2: PyTorch-style (out, in) = (D, D). b1/b2/gamma/beta: (D,)."""
    B, D = x.shape
    if tb is None:
        tb = _pick_tb(B, D)
    assert B % tb == 0

    # PyTorch Linear computes x @ W.T + b; pre-transpose weights (glue, plain JAX).
    w1t = w1.T.astype(jnp.float32)
    w2t = w2.T.astype(jnp.float32)

    # Pack the four (D,) vectors into one (8, D) operand -> a single DMA instead of four.
    packed = jnp.stack(
        [b1.astype(jnp.float32), b2.astype(jnp.float32),
         gamma.astype(jnp.float32), beta.astype(jnp.float32)], axis=0)          # (4, D)
    packed = jnp.concatenate([packed, jnp.zeros((4, D), jnp.float32)], axis=0)   # (8, D)

    grid = (B // tb,)
    row_spec = pl.BlockSpec((tb, D), lambda i: (i, 0))
    full_mat = pl.BlockSpec((D, D), lambda i: (0, 0))   # grid-invariant: fetched once
    vec_spec = pl.BlockSpec((8, D), lambda i: (0, 0))

    # Advisory cost estimate so XLA overlaps the custom call correctly.
    cost = pl.CostEstimate(
        flops=4 * B * D * D + 12 * B * D,            # two matmuls + elementwise
        transcendentals=B,                            # one rsqrt per row
        bytes_accessed=(2 * B * D + 2 * D * D + 8 * D) * 4,
    )

    # Raise the scoped VMEM limit only when the tile footprint needs it (default ~32 MiB).
    footprint = _tile_footprint_bytes(tb, D)
    vmem_limit = None
    if int(footprint * 1.5) > (32 << 20):
        vmem_limit = min(int(footprint * 1.5) + (1 << 20), 100 << 20)

    compiler_params = pltpu.CompilerParams(
        dimension_semantics=("parallel",),
        vmem_limit_bytes=vmem_limit,
    )

    return pl.pallas_call(
        residual_block_kernel,
        out_shape=jax.ShapeDtypeStruct((B, D), x.dtype),
        grid_spec=pltpu.PrefetchScalarGridSpec(
            num_scalar_prefetch=0,
            grid=grid,
            in_specs=[row_spec, full_mat, full_mat, vec_spec],
            out_specs=row_spec,
        ),
        compiler_params=compiler_params,
        cost_estimate=cost,
    )(x, w1t, w2t, packed)


if __name__ == "__main__":
    B, D = 16, 32  # batch=16, hidden size=32

    key = jax.random.PRNGKey(0)
    kx, kw1, kb1, kw2, kb2 = jax.random.split(key, 5)

    x = jax.random.normal(kx, (B, D), dtype=jnp.float32)

    # nn.Linear(size, size): weight (D, D), bias (D,) — deterministic synthetic init.
    bound = 1.0 / (D ** 0.5)
    w1 = jax.random.uniform(kw1, (D, D), minval=-bound, maxval=bound, dtype=jnp.float32)
    b1 = jax.random.uniform(kb1, (D,), minval=-bound, maxval=bound, dtype=jnp.float32)
    w2 = jax.random.uniform(kw2, (D, D), minval=-bound, maxval=bound, dtype=jnp.float32)
    b2 = jax.random.uniform(kb2, (D,), minval=-bound, maxval=bound, dtype=jnp.float32)

    # nn.LayerNorm(size) default init: weight=1, bias=0.
    gamma = jnp.ones((D,), dtype=jnp.float32)
    beta = jnp.zeros((D,), dtype=jnp.float32)

    out = residual_block(x, w1, b1, w2, b2, gamma, beta)
    out = jax.block_until_ready(out)

    # Pure-JAX reference check (same semantics as the PyTorch forward).
    h_ref = jnp.maximum(x @ w1.T + b1, 0.0)
    o_ref = h_ref @ w2.T + b2 + x
    mu = o_ref.mean(-1, keepdims=True)
    var = ((o_ref - mu) ** 2).mean(-1, keepdims=True)
    ref = jnp.maximum((o_ref - mu) / jnp.sqrt(var + 1e-5) * gamma + beta, 0.0)
    assert jnp.allclose(out, ref, atol=1e-5, rtol=1e-5), "mismatch vs reference"

    print("KERNEL_OK")
</pallas_src>

<mosaic_0001>
module attributes {stable_mosaic.version = 11 : i64} {
  func.func @residual_block_kernel(%arg0: i32, %arg1: memref<16x32xf32, #tpu.memory_space<vmem>>, %arg2: memref<32x32xf32, #tpu.memory_space<vmem>>, %arg3: memref<32x32xf32, #tpu.memory_space<vmem>>, %arg4: memref<8x32xf32, #tpu.memory_space<vmem>>, %arg5: memref<16x32xf32, #tpu.memory_space<vmem>>) attributes {dimension_semantics = [#tpu.dimension_semantics<parallel>], iteration_bounds = array<i64: 1>, scalar_prefetch = 0 : i64, scratch_operands = 0 : i64, tpu.core_type = #tpu.core_type<tc>, window_params = [{transform_indices = @transform_0, window_bounds = array<i64: 16, 32>}, {pipeline_mode = #tpu.pipeline_mode<synchronous>, transform_indices = @transform_1, window_bounds = array<i64: 32, 32>}, {pipeline_mode = #tpu.pipeline_mode<synchronous>, transform_indices = @transform_2, window_bounds = array<i64: 32, 32>}, {pipeline_mode = #tpu.pipeline_mode<synchronous>, transform_indices = @transform_3, window_bounds = array<i64: 8, 32>}, {transform_indices = @transform_4, window_bounds = array<i64: 16, 32>}]} {
    %c0 = arith.constant 0 : index
    %c0_0 = arith.constant 0 : index
    %0 = vector.load %arg1[%c0, %c0_0] : memref<16x32xf32, #tpu.memory_space<vmem>>, vector<16x32xf32>
    %c0_1 = arith.constant 0 : index
    %c0_2 = arith.constant 0 : index
    %1 = vector.load %arg4[%c0_1, %c0_2] : memref<8x32xf32, #tpu.memory_space<vmem>>, vector<8x32xf32>
    %2 = vector.extract_strided_slice %1 {offsets = [0, 0], sizes = [1, 32], strides = [1, 1]} : vector<8x32xf32> to vector<1x32xf32>
    %3 = vector.extract_strided_slice %1 {offsets = [1, 0], sizes = [1, 32], strides = [1, 1]} : vector<8x32xf32> to vector<1x32xf32>
    %4 = vector.extract_strided_slice %1 {offsets = [2, 0], sizes = [1, 32], strides = [1, 1]} : vector<8x32xf32> to vector<1x32xf32>
    %5 = vector.extract_strided_slice %1 {offsets = [3, 0], sizes = [1, 32], strides = [1, 1]} : vector<8x32xf32> to vector<1x32xf32>
    %c0_3 = arith.constant 0 : index
    %c0_4 = arith.constant 0 : index
    %6 = vector.load %arg2[%c0_3, %c0_4] : memref<32x32xf32, #tpu.memory_space<vmem>>, vector<32x32xf32>
    %cst = arith.constant dense<0.000000e+00> : vector<16x32xf32>
    %7 = tpu.matmul %0, %6, %cst {dimension_numbers = #tpu.dot_dimension_numbers<[1], [0], [0], [1], [0, 0, 1, 1], [], []>} : vector<16x32xf32>, vector<32x32xf32>, vector<16x32xf32> -> vector<16x32xf32>
    %8 = vector.broadcast %2 : vector<1x32xf32> to vector<16x32xf32>
    %9 = arith.addf %7, %8 : vector<16x32xf32>
    %cst_5 = arith.constant 0.000000e+00 : f32
    %10 = vector.broadcast %cst_5 : f32 to vector<16x32xf32>
    %11 = arith.maximumf %9, %10 : vector<16x32xf32>
    %c0_6 = arith.constant 0 : index
    %c0_7 = arith.constant 0 : index
    %12 = vector.load %arg3[%c0_6, %c0_7] : memref<32x32xf32, #tpu.memory_space<vmem>>, vector<32x32xf32>
    %cst_8 = arith.constant dense<0.000000e+00> : vector<16x32xf32>
    %13 = tpu.matmul %11, %12, %cst_8 {dimension_numbers = #tpu.dot_dimension_numbers<[1], [0], [0], [1], [0, 0, 1, 1], [], []>} : vector<16x32xf32>, vector<32x32xf32>, vector<16x32xf32> -> vector<16x32xf32>
    %14 = vector.broadcast %3 : vector<1x32xf32> to vector<16x32xf32>
    %15 = arith.addf %13, %14 : vector<16x32xf32>
    %16 = arith.addf %15, %0 : vector<16x32xf32>
    %cst_9 = arith.constant dense<0.000000e+00> : vector<16xf32>
    %17 = vector.multi_reduction <add>, %16, %cst_9 [1] : vector<16x32xf32> to vector<16xf32>
    %18 = vector.shape_cast %17 : vector<16xf32> to vector<16x1xf32>
    %cst_10 = arith.constant 3.200000e+01 : f32
    %19 = vector.broadcast %cst_10 : f32 to vector<16x1xf32>
    %20 = arith.divf %18, %19 : vector<16x1xf32>
    %21 = vector.broadcast %20 : vector<16x1xf32> to vector<16x32xf32>
    %22 = arith.subf %16, %21 : vector<16x32xf32>
    %23 = arith.mulf %22, %22 : vector<16x32xf32>
    %cst_11 = arith.constant dense<0.000000e+00> : vector<16xf32>
    %24 = vector.multi_reduction <add>, %23, %cst_11 [1] : vector<16x32xf32> to vector<16xf32>
    %25 = vector.shape_cast %24 : vector<16xf32> to vector<16x1xf32>
    %cst_12 = arith.constant 3.200000e+01 : f32
    %26 = vector.broadcast %cst_12 : f32 to vector<16x1xf32>
    %27 = arith.divf %25, %26 : vector<16x1xf32>
    %cst_13 = arith.constant 9.99999974E-6 : f32
    %28 = vector.broadcast %cst_13 : f32 to vector<16x1xf32>
    %29 = arith.addf %27, %28 : vector<16x1xf32>
    %30 = math.rsqrt %29 : vector<16x1xf32>
    %31 = vector.broadcast %30 : vector<16x1xf32> to vector<16x32xf32>
    %32 = arith.mulf %22, %31 : vector<16x32xf32>
    %33 = vector.broadcast %4 : vector<1x32xf32> to vector<16x32xf32>
    %34 = arith.mulf %32, %33 : vector<16x32xf32>
    %35 = vector.broadcast %5 : vector<1x32xf32> to vector<16x32xf32>
    %36 = arith.addf %34, %35 : vector<16x32xf32>
    %cst_14 = arith.constant 0.000000e+00 : f32
    %37 = vector.broadcast %cst_14 : f32 to vector<16x32xf32>
    %38 = arith.maximumf %36, %37 : vector<16x32xf32>
    %c0_15 = arith.constant 0 : index
    %c0_16 = arith.constant 0 : index
    %39 = vector.load %arg5[%c0_15, %c0_16] : memref<16x32xf32, #tpu.memory_space<vmem>>, vector<16x32xf32>
    tpu.vector_store %arg5[%c0_15, %c0_16], %38 {strides = array<i32>} : memref<16x32xf32, #tpu.memory_space<vmem>>, vector<16x32xf32>,
    return
  }
  func.func @transform_0(%arg0: i32) -> (i32, i32) {
    %c0_i32 = arith.constant 0 : i32
    %c0_i32_0 = arith.constant 0 : i32
    return %arg0, %c0_i32 : i32, i32
  }
  func.func @transform_1(%arg0: i32) -> (i32, i32) {
    %c0_i32 = arith.constant 0 : i32
    %c0_i32_0 = arith.constant 0 : i32
    %c0_i32_1 = arith.constant 0 : i32
    return %c0_i32, %c0_i32_0 : i32, i32
  }
  func.func @transform_2(%arg0: i32) -> (i32, i32) {
    %c0_i32 = arith.constant 0 : i32
    %c0_i32_0 = arith.constant 0 : i32
    %c0_i32_1 = arith.constant 0 : i32
    return %c0_i32, %c0_i32_0 : i32, i32
  }
  func.func @transform_3(%arg0: i32) -> (i32, i32) {
    %c0_i32 = arith.constant 0 : i32
    %c0_i32_0 = arith.constant 0 : i32
    %c0_i32_1 = arith.constant 0 : i32
    return %c0_i32, %c0_i32_0 : i32, i32
  }
  func.func @transform_4(%arg0: i32) -> (i32, i32) {
    %c0_i32 = arith.constant 0 : i32
    %c0_i32_0 = arith.constant 0 : i32
    return %arg0, %c0_i32 : i32, i32
  }
}

</mosaic_0001>

<bundles_post_ra>
// kernel: tpu_custom_call.1
= control target key start
LH: loop header
LB: loop body
LE: loop exit
PB: predicated region body
PF: predicated region fallthrough
CT: control target
= control target key end

     0   :  { %9 = vsyncpa [#allocation3], 0  ;;  %s467_s0 = inlined_call_operand.hbm [shape: f32[16,32], index: 0, kind: input, shape index: {}]   ;;  %s468_s1 = inlined_call_operand.hbm [shape: f32[32,32], index: 1, kind: input, shape index: {}]   ;;  %s469_s2 = inlined_call_operand.hbm [shape: f32[32,32], index: 2, kind: input, shape index: {}]   ;;  %s470_s3 = inlined_call_operand.hbm [shape: f32[8,32], index: 3, kind: input, shape index: {}]   ;;  %s471_s4 = inlined_call_operand.hbm [shape: f32[16,32], index: 4, kind: output, shape index: {}]  }
   0x1   :  { %10 = vsyncpa [#allocation6], 0 }
   0x2   :  { %11 = vsyncpa [#allocation9], 0 }
   0x3   :  { %12 = vsyncpa [#allocation4], 0  ;;  %s30_s17 = sshll.u32 %s468_s1, 4  ;;  %s391_s18 = smov [#allocation5]   ;;  %s31_s17 = int_to_ptr.hbm [resolvable:$true] %s30_s17 }
   0x4   :  { %s32_s19 = sshll.u32 %s391_s18, 4  ;;  %s17_s22 = sshll.u32 %s467_s0, 4  ;;  %s33_s19 = int_to_ptr.vmem [resolvable:$true] %s32_s19  ;;  %s18_s22 = int_to_ptr.hbm [resolvable:$true] %s17_s22 }
   0x5   :  { %s392_s23 = smov 128   ;;  %s393_s24 = smov 8  }
   0x6   :  { %38 = dma.hbm_to_vmem [thread:$0]  %s31_s17, 512, %s33_s19, [#allocation6], %s392_s23, %s392_s23, %s393_s24  }
   0x7   :  { %s394_s25 = smov [#allocation2]   ;;  %s43_s1 = sshll.u32 %s469_s2, 4  ;;  %s44_s1 = int_to_ptr.hbm [resolvable:$true] %s43_s1 }
   0x8   :  { %s19_s26 = sshll.u32 %s394_s25, 4  ;;  %s57_s30 = sshll.u32 %s470_s3, 4  ;;  %s20_s26 = int_to_ptr.vmem [resolvable:$true] %s19_s26  ;;  %s58_s30 = int_to_ptr.hbm [resolvable:$true] %s57_s30 }
   0x9   :  { %25 = dma.hbm_to_vmem [thread:$0]  %s18_s22, 256, %s20_s26, [#allocation3], %s392_s23, %s392_s23, %s393_s24  }
   0xa   :  { %s395_s5 = smov [#allocation7]   ;;  %s396_s7 = smov [#allocation8]  }
   0xb   :  { %s45_s6 = sshll.u32 %s395_s5, 4  ;;  %s59_s2 = sshll.u32 %s396_s7, 4  ;;  %s46_s6 = int_to_ptr.vmem [resolvable:$true] %s45_s6  ;;  %s60_s2 = int_to_ptr.vmem [resolvable:$true] %s59_s2 }
   0xc   :  { %51 = dma.hbm_to_vmem [thread:$0]  %s44_s1, 512, %s46_s6, [#allocation6], %s392_s23, %s392_s23, %s393_s24  }
   0xd   :  { %62 = dma.hbm_to_vmem [thread:$0]  %s58_s30, 128, %s60_s2, [#allocation9]  }
   0xe   :  { %383 = dma.done.wait [#allocation3], 256  }
   0xf   :  { %384 = vsyncadd [#allocation3], 4294967040 }
  0x10   :  { %385 = dma.done.wait [#allocation6], 1024  }
  0x11   :  { %386 = vsyncadd [#allocation6], 4294966272 }
  0x12   :  { %387 = dma.done.wait [#allocation9], 128  }
  0x13   :  { %388 = vsyncadd [#allocation9], 4294967168  ;;  %v85_v0 = vld [vmem:[#allocation5 + $0x18] sm:$0xff]  ;;  %v84_v1 = vld [vmem:[#allocation5 + $0x10] sm:$0xff]  ;;  %vm87_vm0 = vcmask 261120   ;;  %v397_v27 = vmov 32.0  }
  0x14   :  { %106 = vmatpush.msra.mxu0 %v85_v0  ;;  %241 = vmatpush.msra.mxu2 %v85_v0  ;;  %v83_v2 = vld [vmem:[#allocation5 + $0x8] sm:$0xff]  ;;  %v122_v3 = vld [vmem:[#allocation7 + $0x18] sm:$0xff]  ;;  %v82_v4 = vld [vmem:[#allocation5] sm:$0xff]  ;;  %257 = vrcp.f32 %v397_v27  ;;  %s398_s3 = smov [#allocation10]   ;;  %s222_s11 = sshll.u32 %s471_s4, 4  ;;  %s223_s11 = int_to_ptr.hbm [resolvable:$true] %s222_s11 }
  0x15   :  { %142 = vmatpush.msra.mxu1 %v122_v3  ;;  %245 = vmatpush.msra.mxu3 %v122_v3  ;;  %v79_v5 = vld [vmem:[#allocation2] sm:$0xff]  ;;  %v80_v6 = vld [vmem:[#allocation2 + $0x8] sm:$0xff]  ;;  %v120_v8 = vld [vmem:[#allocation7 + $0x8] sm:$0xff]  ;;  %s220_s8 = sshll.u32 %s398_s3, 4  ;;  %s221_s8 = int_to_ptr.vmem [resolvable:$true] %s220_s8 }
  0x16   :  { %107 = vmatpush.msra.mxu0 %v84_v1  ;;  %242 = vmatpush.msra.mxu2 %v84_v1  ;;  %v121_v7 = vld [vmem:[#allocation7 + $0x10] sm:$0xff]  ;;  %v119_v9 = vld [vmem:[#allocation7] sm:$0xff] }
  0x17   :  { %143 = vmatpush.msra.mxu1 %v121_v7  ;;  %246 = vmatpush.msra.mxu3 %v121_v7  ;;  %v447_v10 = vld [vmem:[#allocation8] sm:$0xff] }
  0x18   :  { %108 = vmatpush.msra.mxu0 %v83_v2  ;;  %243 = vmatpush.msra.mxu2 %v83_v2  ;;  %v86_v11 = vperm.slane %v447_v10, 0  ;;  %v123_v18 = vperm.slane %v447_v10, 1  ;;  %v206_v56 = vperm.slane %v447_v10, 2  ;;  %v209_v59 = vperm.slane %v447_v10, 3 }
  0x19   :  { %144 = vmatpush.msra.mxu1 %v120_v8  ;;  %247 = vmatpush.msra.mxu3 %v120_v8 }
  0x1a   :  { %109 = vmatpush.msra.mxu0 %v82_v4  ;;  %244 = vmatpush.msra.mxu2 %v82_v4  ;;  %v258_v28 = vpop.eup %257 }
  0x1b   :  { %237 = vmatmul.msk.f32.vlgmr.msra.gmra.mxu0 %vm87_vm0, %v79_v5  ;;  %238 = vmatmul.msk.f32.vlgmr.msra.gmra.mxu2 %vm87_vm0, %v80_v6  ;;  %v162_v29 = vmul.f32 32.0, %v258_v28  ;;  %vm166_vm1 = vweird.f32 %v258_v28 }
  0x1c   :  { %145 = vmatpush.msra.mxu1 %v119_v9  ;;  %248 = vmatpush.msra.mxu3 %v119_v9 }
  0x1d   :  { %v163_v30 = vsub.f32 1.0, %v162_v29 }
  0x1f   :  { %v164_v31 = vmul.f32 %v258_v28, %v163_v30 }
  0x21   :  { %v165_v32 = vadd.f32 %v258_v28, %v164_v31 }
  0x23   :  { %v167_v33 = vsel %vm166_vm1, %v258_v28, %v165_v32 }
  0x98   :  { %v111_v12 = vpop.f32.mrf.mxu0 }
  0x99   :  { %v112_v13 = vadd.f32 %v111_v12, %v86_v11 }
  0x9b   :  { %v117_v14 = vmax.f32 %v112_v13, 0.0 }
  0x9d   :  { %239 = vmatmul.msk.f32.vlgmr.msra.gmra.mxu1 %vm87_vm0, %v117_v14 }
  0x9e   :  { %v114_v15 = vpop.f32.mrf.mxu2 }
  0x9f   :  { %v115_v16 = vadd.f32 %v114_v15, %v86_v11 }
  0xa1   :  { %v118_v17 = vmax.f32 %v115_v16, 0.0 }
  0xa3   :  { %240 = vmatmul.msk.f32.vlgmr.msra.gmra.mxu3 %vm87_vm0, %v118_v17 }
 0x11a   :  { %v147_v19 = vpop.f32.mrf.mxu1 }
 0x11b   :  { %v148_v20 = vadd.f32 %v147_v19, %v123_v18 }
 0x11d   :  { %v153_v21 = vadd.f32 %v148_v20, %v79_v5 }
 0x11f   :  { %v155_v22 = vsel %vm87_vm0, %v153_v21, 0.0 }
 0x120   :  { %156 = vadd.xlane.f32.xlu0 %v155_v22 }
 0x126   :  { %v150_v23 = vpop.f32.mrf.mxu3 }
 0x127   :  { %v151_v24 = vadd.f32 %v150_v23, %v123_v18 }
 0x129   :  { %v154_v25 = vadd.f32 %v151_v24, %v80_v6 }
 0x12b   :  { %v158_v26 = vsel %vm87_vm0, %v154_v25, 0.0 }
 0x12c   :  { %159 = vadd.xlane.f32.xlu0 %v158_v26 }
 0x193   :  { %v157_v34 = vpop.xlane.xlu0 %156 }
 0x194   :  { %v168_v35 = vmul.f32 %v167_v33, %v157_v34 }
 0x196   :  { %v170_v36 = vsub.f32 %v153_v21, %v168_v35 }
 0x198   :  { %v172_v37 = vmul.f32 %v170_v36, %v170_v36 }
 0x19a   :  { %v174_v38 = vsel %vm87_vm0, %v172_v37, 0.0 }
 0x19b   :  { %175 = vadd.xlane.f32.xlu1 %v174_v38 }
 0x19f   :  { %v160_v39 = vpop.xlane.xlu0 %159 }
 0x1a0   :  { %v169_v40 = vmul.f32 %v167_v33, %v160_v39 }
 0x1a2   :  { %v171_v41 = vsub.f32 %v154_v25, %v169_v40 }
 0x1a4   :  { %v173_v42 = vmul.f32 %v171_v41, %v171_v41 }
 0x1a6   :  { %v177_v43 = vsel %vm87_vm0, %v173_v42, 0.0 }
 0x1a7   :  { %178 = vadd.xlane.f32.xlu1 %v177_v43 }
 0x20e   :  { %v176_v44 = vpop.xlane.xlu1 %175 }
 0x20f   :  { %v180_v45 = vmul.f32 %v176_v44, %v167_v33 }
 0x211   :  { %v182_v46 = vadd.f32 1e-05, %v180_v45 }
 0x213   :  { %259 = vrsqrt.f32 %v182_v46  ;;  %vm190_vm3 = vweird.f32 %v182_v46 }
 0x219   :  { %v260_v47 = vpop.eup %259 }
 0x21a   :  { %v185_v48 = vmul.f32 %v260_v47, %v182_v46  ;;  %v179_v49 = vpop.xlane.xlu1 %178  ;;  %vm191_vm2 = vweird.f32 %v260_v47 }
 0x21b   :  { %v181_v50 = vmul.f32 %v179_v49, %v167_v33  ;;  %vm192_vm4 = vmor %vm190_vm3, %vm191_vm2 }
 0x21c   :  { %v186_v51 = vmul.f32 %v260_v47, %v185_v48 }
 0x21d   :  { %v183_v52 = vadd.f32 1e-05, %v181_v50 }
 0x21e   :  { %v187_v53 = vmul.f32 0.5, %v186_v51 }
 0x21f   :  { %261 = vrsqrt.f32 %v183_v52  ;;  %vm200_vm6 = vweird.f32 %v183_v52 }
 0x220   :  { %v188_v54 = vsub.f32 1.5, %v187_v53 }
 0x222   :  { %v189_v55 = vmul.f32 %v260_v47, %v188_v54 }
 0x224   :  { %v193_v57 = vsel %vm192_vm4, %v260_v47, %v189_v55 }
 0x225   :  { %v262_v58 = vpop.eup %261  ;;  %v204_v60 = vmul.f32 %v193_v57, %v170_v36 }
 0x226   :  { %v195_v61 = vmul.f32 %v262_v58, %v183_v52  ;;  %vm201_vm5 = vweird.f32 %v262_v58 }
 0x227   :  { %v207_v62 = vmul.f32 %v206_v56, %v204_v60  ;;  %vm202_vm7 = vmor %vm200_vm6, %vm201_vm5 }
 0x228   :  { %v196_v63 = vmul.f32 %v262_v58, %v195_v61 }
 0x229   :  { %v210_v0 = vadd.f32 %v209_v59, %v207_v62 }
 0x22a   :  { %v197_v1 = vmul.f32 0.5, %v196_v63 }
 0x22b   :  { %v212_v2 = vmax.f32 %v210_v0, 0.0 }
 0x22c   :  { %v198_v3 = vsub.f32 1.5, %v197_v1 }
 0x22d   :  { %214 = vst.msk [vmem:[#allocation10] sm:$0xff] %vm87_vm0, %v212_v2 }
 0x22e   :  { %v199_v4 = vmul.f32 %v262_v58, %v198_v3 }
 0x230   :  { %v203_v5 = vsel %vm202_vm7, %v262_v58, %v199_v4 }
 0x231   :  { %v205_v6 = vmul.f32 %v203_v5, %v171_v41 }
 0x233   :  { %v208_v7 = vmul.f32 %v206_v56, %v205_v6 }
 0x235   :  { %v211_v8 = vadd.f32 %v209_v59, %v208_v7 }
 0x237   :  { %v213_v9 = vmax.f32 %v211_v8, 0.0 }
 0x239   :  { %215 = vst.msk [vmem:[#allocation10 + $0x8] sm:$0xff] %vm87_vm0, %v213_v9 }
 0x23a   :  { %228 = dma.vmem_to_hbm [thread:$0]  %s221_s8, 256, %s223_s11, [#allocation4], %s392_s23, %s392_s23, %s393_s24  }
 0x23b   :  { %389 = dma.done.wait [#allocation4], 256  }
 0x23c   :  { %390 = vsyncadd [#allocation4], 4294967040 }
 0x23d   :  { %233 = vsyncpa [#allocation3], 1 }
 0x23e   :  { %234 = vsyncpa [#allocation6], 1 }
 0x23f   :  { %235 = vsyncpa [#allocation9], 1 }
 0x240   :  { %236 = vsyncpa [#allocation4], 1 }

</bundles_post_ra>
